<compile_context>
chip_gen: v7x
topology: tpu7x:2x2x1
jax: 0.10.0
libtpu: 0.0.40
codegen_flags: <defaults>
</compile_context>

<pallas_src>
import jax
import jax.numpy as jnp
from jax.experimental import pallas as pl
from jax.experimental.pallas import tpu as pltpu

EMB_DIM = 300                                   # module asserts shape[-1] == 300
LANE = 128
EMB_DIM_PAD = ((EMB_DIM + LANE - 1) // LANE) * LANE   # 384 = 3 full vregs / row
ROWS_PER_STEP = 8                               # dense 8-sublane output slab


def _gather_kernel(idx_ref, table_ref, out_ref, slab_ref, sem_ref):
    """Gather ROWS_PER_STEP table rows per grid step.

    idx_ref   : (B_pad,) int32 in SMEM (scalar prefetch)
    table_ref : (V, 384) f32 in HBM (memory_space=pl.ANY, no auto-DMA)
    out_ref   : (8, 384) f32 VMEM output block
    slab_ref  : (8, 384) f32 VMEM scratch
    sem_ref   : (8,) DMA semaphores
    """
    i = pl.program_id(0)

    # Issue all R row-DMAs first so they are in flight concurrently ...
    copies = []
    for r in range(ROWS_PER_STEP):              # static, unrolled
        row = idx_ref[i * ROWS_PER_STEP + r]
        cp = pltpu.make_async_copy(
            table_ref.at[pl.ds(row, 1)],        # (1, 384) HBM window
            slab_ref.at[pl.ds(r, 1)],           # (1, 384) VMEM row
            sem_ref.at[r],
        )
        cp.start()
        copies.append(cp)

    # ... then wait for them all.
    for cp in copies:
        cp.wait()

    # One dense (8, 384) store — fully lane/sublane aligned.
    out_ref[...] = slab_ref[...]


def embedding_gather(indices: jax.Array, table_padded: jax.Array) -> jax.Array:
    """Gather rows `table[indices]` with a Pallas kernel.

    indices:      (B,) int32
    table_padded: (V, 384) float32  (columns 300..383 are zero padding)
    returns:      (B, 300) float32
    """
    B = indices.shape[0]
    V, D_pad = table_padded.shape
    assert D_pad == EMB_DIM_PAD

    # Bucket the batch to a multiple of ROWS_PER_STEP (pad with a valid row 0)
    # so one compiled executable covers a range of batch sizes.
    B_pad = ((B + ROWS_PER_STEP - 1) // ROWS_PER_STEP) * ROWS_PER_STEP
    if B_pad != B:
        indices = jnp.concatenate(
            [indices, jnp.zeros((B_pad - B,), dtype=indices.dtype)]
        )

    grid_spec = pltpu.PrefetchScalarGridSpec(
        num_scalar_prefetch=1,                  # indices land in SMEM
        grid=(B_pad // ROWS_PER_STEP,),
        in_specs=[
            # Table stays in HBM; the kernel DMAs the rows it needs.
            pl.BlockSpec(memory_space=pl.ANY),
        ],
        out_specs=pl.BlockSpec(
            (ROWS_PER_STEP, D_pad), lambda i, idx_ref: (i, 0)
        ),
        scratch_shapes=[
            pltpu.VMEM((ROWS_PER_STEP, D_pad), table_padded.dtype),
            pltpu.SemaphoreType.DMA((ROWS_PER_STEP,)),
        ],
    )

    out_padded = pl.pallas_call(
        _gather_kernel,
        grid_spec=grid_spec,
        out_shape=jax.ShapeDtypeStruct((B_pad, D_pad), table_padded.dtype),
        compiler_params=pltpu.CompilerParams(
            # Each step writes a disjoint output slab -> safe to shard across
            # both TensorCores on v7x; harmless on v5e/v6e.
            dimension_semantics=("parallel",),
        ),
    )(indices, table_padded)

    # Slice back to the caller-visible (B, 300) shape.
    return out_padded[:B, :EMB_DIM]


class CustomNewsEncoder:
    """JAX/Pallas equivalent of the PyTorch CustomNewsEncoder.

    Instead of torch.load-ing a .pt embedding dict, the (frozen) embedding
    table is provided directly.  forward(news_ids) maps string ids to indices
    and gathers their 300-d embeddings via the Pallas kernel.
    """

    def __init__(self, embeddings_tensor: jax.Array, news_ids):
        assert embeddings_tensor.shape[-1] == EMB_DIM, (
            f"Expected embedding dim {EMB_DIM}, got {embeddings_tensor.shape[-1]}"
        )
        self.embedding_weight = jnp.asarray(embeddings_tensor, dtype=jnp.float32)
        # Frozen table -> pad the lane dim 300 -> 384 once, for free.
        pad = EMB_DIM_PAD - EMB_DIM
        self._table_padded = jnp.pad(self.embedding_weight, ((0, 0), (0, pad)))
        self.news_id_to_index = {nid: i for i, nid in enumerate(news_ids)}

    def __call__(self, news_ids):
        try:
            indices = jnp.asarray(
                [self.news_id_to_index[nid] for nid in news_ids], dtype=jnp.int32
            )
        except KeyError as e:
            raise KeyError(f"News ID not found in embedding dictionary: {e}")
        embeddings = embedding_gather(indices, self._table_padded)
        assert embeddings.shape[-1] == EMB_DIM, (
            f"Expected embedding dim {EMB_DIM}, got {embeddings.shape[-1]}"
        )
        return embeddings


if __name__ == "__main__":
    key = jax.random.PRNGKey(0)

    # Deterministic synthetic "loaded" embedding dictionary: 32 news ids, 300-d.
    vocab_size = 32
    news_vocab = [f"N{i:04d}" for i in range(vocab_size)]
    table = jax.random.normal(key, (vocab_size, EMB_DIM), dtype=jnp.float32)

    encoder = CustomNewsEncoder(table, news_vocab)

    # A batch of news ids (repeats, out of order, not a multiple of 8 so the
    # bucketing/padding path and a 2-step grid are both exercised).
    batch_ids = [
        "N0003", "N0017", "N0000", "N0031", "N0017", "N0008", "N0025",
        "N0001", "N0031", "N0012", "N0029", "N0005", "N0017",
    ]
    out = encoder(batch_ids)
    out = jax.block_until_ready(out)

    # Reference check against plain JAX gather.
    ref_idx = jnp.asarray(
        [encoder.news_id_to_index[nid] for nid in batch_ids], dtype=jnp.int32
    )
    ref = table[ref_idx]
    assert out.shape == (len(batch_ids), EMB_DIM)
    assert jnp.allclose(out, ref), "Pallas gather mismatch vs reference"

    print("KERNEL_OK")
</pallas_src>

<mosaic_0001>
module attributes {stable_mosaic.version = 11 : i64} {
  func.func @_gather_kernel(%arg0: i32, %arg1: memref<16xi32, #tpu.memory_space<smem>>, %arg2: memref<32x384xf32, #tpu.memory_space<any>>, %arg3: memref<8x384xf32, #tpu.memory_space<vmem>>, %arg4: memref<8x384xf32, #tpu.memory_space<vmem>>, %arg5: memref<8x!tpu.dma_semaphore, #tpu.memory_space<semaphore_mem>>) attributes {dimension_semantics = [#tpu.dimension_semantics<parallel>], iteration_bounds = array<i64: 2>, scalar_prefetch = 1 : i64, scratch_operands = 2 : i64, tpu.core_type = #tpu.core_type<tc>, window_params = [{}, {transform_indices = @transform_1, window_bounds = array<i64: 8, 384>}]} {
    %c8_i32 = arith.constant 8 : i32
    %0 = arith.muli %arg0, %c8_i32 : i32
    %c0_i32 = arith.constant 0 : i32
    %1 = arith.addi %0, %c0_i32 : i32
    %2 = arith.index_cast %1 : i32 to index
    %3 = memref.load %arg1[%2] : memref<16xi32, #tpu.memory_space<smem>>
    %c0_i32_0 = arith.constant 0 : i32
    %c0_i32_1 = arith.constant 0 : i32
    %4 = tpu.memref_slice %arg2[%3, %c0_i32_1] : memref<32x384xf32, #tpu.memory_space<any>> -> memref<1x384xf32, #tpu.memory_space<any>>
    %c0_i32_2 = arith.constant 0 : i32
    %c0_i32_3 = arith.constant 0 : i32
    %5 = tpu.memref_slice %arg4[%c0_i32_2, %c0_i32_3] : memref<8x384xf32, #tpu.memory_space<vmem>> -> memref<1x384xf32, #tpu.memory_space<vmem>>
    %6 = tpu.memref_slice %arg5[%c0_i32_0] : memref<8x!tpu.dma_semaphore, #tpu.memory_space<semaphore_mem>> -> memref<1x!tpu.dma_semaphore, #tpu.memory_space<semaphore_mem>>
    %7 = tpu.memref_squeeze %6 : memref<1x!tpu.dma_semaphore, #tpu.memory_space<semaphore_mem>> -> memref<!tpu.dma_semaphore, #tpu.memory_space<semaphore_mem>>
    tpu.enqueue_dma source(%4 : memref<1x384xf32, #tpu.memory_space<any>>) target(%5 : memref<1x384xf32, #tpu.memory_space<vmem>>) target_semaphore(%7 : memref<!tpu.dma_semaphore, #tpu.memory_space<semaphore_mem>>)
    %c8_i32_4 = arith.constant 8 : i32
    %8 = arith.muli %arg0, %c8_i32_4 : i32
    %c1_i32 = arith.constant 1 : i32
    %9 = arith.addi %8, %c1_i32 : i32
    %10 = arith.index_cast %9 : i32 to index
    %11 = memref.load %arg1[%10] : memref<16xi32, #tpu.memory_space<smem>>
    %c1_i32_5 = arith.constant 1 : i32
    %c0_i32_6 = arith.constant 0 : i32
    %12 = tpu.memref_slice %arg2[%11, %c0_i32_6] : memref<32x384xf32, #tpu.memory_space<any>> -> memref<1x384xf32, #tpu.memory_space<any>>
    %c1_i32_7 = arith.constant 1 : i32
    %c0_i32_8 = arith.constant 0 : i32
    %13 = tpu.memref_slice %arg4[%c1_i32_7, %c0_i32_8] : memref<8x384xf32, #tpu.memory_space<vmem>> -> memref<1x384xf32, #tpu.memory_space<vmem>>
    %14 = tpu.memref_slice %arg5[%c1_i32_5] : memref<8x!tpu.dma_semaphore, #tpu.memory_space<semaphore_mem>> -> memref<1x!tpu.dma_semaphore, #tpu.memory_space<semaphore_mem>>
    %15 = tpu.memref_squeeze %14 : memref<1x!tpu.dma_semaphore, #tpu.memory_space<semaphore_mem>> -> memref<!tpu.dma_semaphore, #tpu.memory_space<semaphore_mem>>
    tpu.enqueue_dma source(%12 : memref<1x384xf32, #tpu.memory_space<any>>) target(%13 : memref<1x384xf32, #tpu.memory_space<vmem>>) target_semaphore(%15 : memref<!tpu.dma_semaphore, #tpu.memory_space<semaphore_mem>>)
    %c8_i32_9 = arith.constant 8 : i32
    %16 = arith.muli %arg0, %c8_i32_9 : i32
    %c2_i32 = arith.constant 2 : i32
    %17 = arith.addi %16, %c2_i32 : i32
    %18 = arith.index_cast %17 : i32 to index
    %19 = memref.load %arg1[%18] : memref<16xi32, #tpu.memory_space<smem>>
    %c2_i32_10 = arith.constant 2 : i32
    %c0_i32_11 = arith.constant 0 : i32
    %20 = tpu.memref_slice %arg2[%19, %c0_i32_11] : memref<32x384xf32, #tpu.memory_space<any>> -> memref<1x384xf32, #tpu.memory_space<any>>
    %c2_i32_12 = arith.constant 2 : i32
    %c0_i32_13 = arith.constant 0 : i32
    %21 = tpu.memref_slice %arg4[%c2_i32_12, %c0_i32_13] : memref<8x384xf32, #tpu.memory_space<vmem>> -> memref<1x384xf32, #tpu.memory_space<vmem>>
    %22 = tpu.memref_slice %arg5[%c2_i32_10] : memref<8x!tpu.dma_semaphore, #tpu.memory_space<semaphore_mem>> -> memref<1x!tpu.dma_semaphore, #tpu.memory_space<semaphore_mem>>
    %23 = tpu.memref_squeeze %22 : memref<1x!tpu.dma_semaphore, #tpu.memory_space<semaphore_mem>> -> memref<!tpu.dma_semaphore, #tpu.memory_space<semaphore_mem>>
    tpu.enqueue_dma source(%20 : memref<1x384xf32, #tpu.memory_space<any>>) target(%21 : memref<1x384xf32, #tpu.memory_space<vmem>>) target_semaphore(%23 : memref<!tpu.dma_semaphore, #tpu.memory_space<semaphore_mem>>)
    %c8_i32_14 = arith.constant 8 : i32
    %24 = arith.muli %arg0, %c8_i32_14 : i32
    %c3_i32 = arith.constant 3 : i32
    %25 = arith.addi %24, %c3_i32 : i32
    %26 = arith.index_cast %25 : i32 to index
    %27 = memref.load %arg1[%26] : memref<16xi32, #tpu.memory_space<smem>>
    %c3_i32_15 = arith.constant 3 : i32
    %c0_i32_16 = arith.constant 0 : i32
    %28 = tpu.memref_slice %arg2[%27, %c0_i32_16] : memref<32x384xf32, #tpu.memory_space<any>> -> memref<1x384xf32, #tpu.memory_space<any>>
    %c3_i32_17 = arith.constant 3 : i32
    %c0_i32_18 = arith.constant 0 : i32
    %29 = tpu.memref_slice %arg4[%c3_i32_17, %c0_i32_18] : memref<8x384xf32, #tpu.memory_space<vmem>> -> memref<1x384xf32, #tpu.memory_space<vmem>>
    %30 = tpu.memref_slice %arg5[%c3_i32_15] : memref<8x!tpu.dma_semaphore, #tpu.memory_space<semaphore_mem>> -> memref<1x!tpu.dma_semaphore, #tpu.memory_space<semaphore_mem>>
    %31 = tpu.memref_squeeze %30 : memref<1x!tpu.dma_semaphore, #tpu.memory_space<semaphore_mem>> -> memref<!tpu.dma_semaphore, #tpu.memory_space<semaphore_mem>>
    tpu.enqueue_dma source(%28 : memref<1x384xf32, #tpu.memory_space<any>>) target(%29 : memref<1x384xf32, #tpu.memory_space<vmem>>) target_semaphore(%31 : memref<!tpu.dma_semaphore, #tpu.memory_space<semaphore_mem>>)
    %c8_i32_19 = arith.constant 8 : i32
    %32 = arith.muli %arg0, %c8_i32_19 : i32
    %c4_i32 = arith.constant 4 : i32
    %33 = arith.addi %32, %c4_i32 : i32
    %34 = arith.index_cast %33 : i32 to index
    %35 = memref.load %arg1[%34] : memref<16xi32, #tpu.memory_space<smem>>
    %c4_i32_20 = arith.constant 4 : i32
    %c0_i32_21 = arith.constant 0 : i32
    %36 = tpu.memref_slice %arg2[%35, %c0_i32_21] : memref<32x384xf32, #tpu.memory_space<any>> -> memref<1x384xf32, #tpu.memory_space<any>>
    %c4_i32_22 = arith.constant 4 : i32
    %c0_i32_23 = arith.constant 0 : i32
    %37 = tpu.memref_slice %arg4[%c4_i32_22, %c0_i32_23] : memref<8x384xf32, #tpu.memory_space<vmem>> -> memref<1x384xf32, #tpu.memory_space<vmem>>
    %38 = tpu.memref_slice %arg5[%c4_i32_20] : memref<8x!tpu.dma_semaphore, #tpu.memory_space<semaphore_mem>> -> memref<1x!tpu.dma_semaphore, #tpu.memory_space<semaphore_mem>>
    %39 = tpu.memref_squeeze %38 : memref<1x!tpu.dma_semaphore, #tpu.memory_space<semaphore_mem>> -> memref<!tpu.dma_semaphore, #tpu.memory_space<semaphore_mem>>
    tpu.enqueue_dma source(%36 : memref<1x384xf32, #tpu.memory_space<any>>) target(%37 : memref<1x384xf32, #tpu.memory_space<vmem>>) target_semaphore(%39 : memref<!tpu.dma_semaphore, #tpu.memory_space<semaphore_mem>>)
    %c8_i32_24 = arith.constant 8 : i32
    %40 = arith.muli %arg0, %c8_i32_24 : i32
    %c5_i32 = arith.constant 5 : i32
    %41 = arith.addi %40, %c5_i32 : i32
    %42 = arith.index_cast %41 : i32 to index
    %43 = memref.load %arg1[%42] : memref<16xi32, #tpu.memory_space<smem>>
    %c5_i32_25 = arith.constant 5 : i32
    %c0_i32_26 = arith.constant 0 : i32
    %44 = tpu.memref_slice %arg2[%43, %c0_i32_26] : memref<32x384xf32, #tpu.memory_space<any>> -> memref<1x384xf32, #tpu.memory_space<any>>
    %c5_i32_27 = arith.constant 5 : i32
    %c0_i32_28 = arith.constant 0 : i32
    %45 = tpu.memref_slice %arg4[%c5_i32_27, %c0_i32_28] : memref<8x384xf32, #tpu.memory_space<vmem>> -> memref<1x384xf32, #tpu.memory_space<vmem>>
    %46 = tpu.memref_slice %arg5[%c5_i32_25] : memref<8x!tpu.dma_semaphore, #tpu.memory_space<semaphore_mem>> -> memref<1x!tpu.dma_semaphore, #tpu.memory_space<semaphore_mem>>
    %47 = tpu.memref_squeeze %46 : memref<1x!tpu.dma_semaphore, #tpu.memory_space<semaphore_mem>> -> memref<!tpu.dma_semaphore, #tpu.memory_space<semaphore_mem>>
    tpu.enqueue_dma source(%44 : memref<1x384xf32, #tpu.memory_space<any>>) target(%45 : memref<1x384xf32, #tpu.memory_space<vmem>>) target_semaphore(%47 : memref<!tpu.dma_semaphore, #tpu.memory_space<semaphore_mem>>)
    %c8_i32_29 = arith.constant 8 : i32
    %48 = arith.muli %arg0, %c8_i32_29 : i32
    %c6_i32 = arith.constant 6 : i32
    %49 = arith.addi %48, %c6_i32 : i32
    %50 = arith.index_cast %49 : i32 to index
    %51 = memref.load %arg1[%50] : memref<16xi32, #tpu.memory_space<smem>>
    %c6_i32_30 = arith.constant 6 : i32
    %c0_i32_31 = arith.constant 0 : i32
    %52 = tpu.memref_slice %arg2[%51, %c0_i32_31] : memref<32x384xf32, #tpu.memory_space<any>> -> memref<1x384xf32, #tpu.memory_space<any>>
    %c6_i32_32 = arith.constant 6 : i32
    %c0_i32_33 = arith.constant 0 : i32
    %53 = tpu.memref_slice %arg4[%c6_i32_32, %c0_i32_33] : memref<8x384xf32, #tpu.memory_space<vmem>> -> memref<1x384xf32, #tpu.memory_space<vmem>>
    %54 = tpu.memref_slice %arg5[%c6_i32_30] : memref<8x!tpu.dma_semaphore, #tpu.memory_space<semaphore_mem>> -> memref<1x!tpu.dma_semaphore, #tpu.memory_space<semaphore_mem>>
    %55 = tpu.memref_squeeze %54 : memref<1x!tpu.dma_semaphore, #tpu.memory_space<semaphore_mem>> -> memref<!tpu.dma_semaphore, #tpu.memory_space<semaphore_mem>>
    tpu.enqueue_dma source(%52 : memref<1x384xf32, #tpu.memory_space<any>>) target(%53 : memref<1x384xf32, #tpu.memory_space<vmem>>) target_semaphore(%55 : memref<!tpu.dma_semaphore, #tpu.memory_space<semaphore_mem>>)
    %c8_i32_34 = arith.constant 8 : i32
    %56 = arith.muli %arg0, %c8_i32_34 : i32
    %c7_i32 = arith.constant 7 : i32
    %57 = arith.addi %56, %c7_i32 : i32
    %58 = arith.index_cast %57 : i32 to index
    %59 = memref.load %arg1[%58] : memref<16xi32, #tpu.memory_space<smem>>
    %c7_i32_35 = arith.constant 7 : i32
    %c0_i32_36 = arith.constant 0 : i32
    %60 = tpu.memref_slice %arg2[%59, %c0_i32_36] : memref<32x384xf32, #tpu.memory_space<any>> -> memref<1x384xf32, #tpu.memory_space<any>>
    %c7_i32_37 = arith.constant 7 : i32
    %c0_i32_38 = arith.constant 0 : i32
    %61 = tpu.memref_slice %arg4[%c7_i32_37, %c0_i32_38] : memref<8x384xf32, #tpu.memory_space<vmem>> -> memref<1x384xf32, #tpu.memory_space<vmem>>
    %62 = tpu.memref_slice %arg5[%c7_i32_35] : memref<8x!tpu.dma_semaphore, #tpu.memory_space<semaphore_mem>> -> memref<1x!tpu.dma_semaphore, #tpu.memory_space<semaphore_mem>>
    %63 = tpu.memref_squeeze %62 : memref<1x!tpu.dma_semaphore, #tpu.memory_space<semaphore_mem>> -> memref<!tpu.dma_semaphore, #tpu.memory_space<semaphore_mem>>
    tpu.enqueue_dma source(%60 : memref<1x384xf32, #tpu.memory_space<any>>) target(%61 : memref<1x384xf32, #tpu.memory_space<vmem>>) target_semaphore(%63 : memref<!tpu.dma_semaphore, #tpu.memory_space<semaphore_mem>>)
    %c0_i32_39 = arith.constant 0 : i32
    %c0_i32_40 = arith.constant 0 : i32
    %64 = tpu.memref_slice %arg2[%3, %c0_i32_40] : memref<32x384xf32, #tpu.memory_space<any>> -> memref<1x384xf32, #tpu.memory_space<any>>
    %c0_i32_41 = arith.constant 0 : i32
    %c0_i32_42 = arith.constant 0 : i32
    %65 = tpu.memref_slice %arg4[%c0_i32_41, %c0_i32_42] : memref<8x384xf32, #tpu.memory_space<vmem>> -> memref<1x384xf32, #tpu.memory_space<vmem>>
    %66 = tpu.memref_slice %arg5[%c0_i32_39] : memref<8x!tpu.dma_semaphore, #tpu.memory_space<semaphore_mem>> -> memref<1x!tpu.dma_semaphore, #tpu.memory_space<semaphore_mem>>
    %67 = tpu.memref_squeeze %66 : memref<1x!tpu.dma_semaphore, #tpu.memory_space<semaphore_mem>> -> memref<!tpu.dma_semaphore, #tpu.memory_space<semaphore_mem>>
    tpu.wait_dma2 semaphore(%67 : memref<!tpu.dma_semaphore, #tpu.memory_space<semaphore_mem>>) src(%64 : memref<1x384xf32, #tpu.memory_space<any>>) dst(%65 : memref<1x384xf32, #tpu.memory_space<vmem>>)
    %c1_i32_43 = arith.constant 1 : i32
    %c0_i32_44 = arith.constant 0 : i32
    %68 = tpu.memref_slice %arg2[%11, %c0_i32_44] : memref<32x384xf32, #tpu.memory_space<any>> -> memref<1x384xf32, #tpu.memory_space<any>>
    %c1_i32_45 = arith.constant 1 : i32
    %c0_i32_46 = arith.constant 0 : i32
    %69 = tpu.memref_slice %arg4[%c1_i32_45, %c0_i32_46] : memref<8x384xf32, #tpu.memory_space<vmem>> -> memref<1x384xf32, #tpu.memory_space<vmem>>
    %70 = tpu.memref_slice %arg5[%c1_i32_43] : memref<8x!tpu.dma_semaphore, #tpu.memory_space<semaphore_mem>> -> memref<1x!tpu.dma_semaphore, #tpu.memory_space<semaphore_mem>>
    %71 = tpu.memref_squeeze %70 : memref<1x!tpu.dma_semaphore, #tpu.memory_space<semaphore_mem>> -> memref<!tpu.dma_semaphore, #tpu.memory_space<semaphore_mem>>
    tpu.wait_dma2 semaphore(%71 : memref<!tpu.dma_semaphore, #tpu.memory_space<semaphore_mem>>) src(%68 : memref<1x384xf32, #tpu.memory_space<any>>) dst(%69 : memref<1x384xf32, #tpu.memory_space<vmem>>)
    %c2_i32_47 = arith.constant 2 : i32
    %c0_i32_48 = arith.constant 0 : i32
    %72 = tpu.memref_slice %arg2[%19, %c0_i32_48] : memref<32x384xf32, #tpu.memory_space<any>> -> memref<1x384xf32, #tpu.memory_space<any>>
    %c2_i32_49 = arith.constant 2 : i32
    %c0_i32_50 = arith.constant 0 : i32
    %73 = tpu.memref_slice %arg4[%c2_i32_49, %c0_i32_50] : memref<8x384xf32, #tpu.memory_space<vmem>> -> memref<1x384xf32, #tpu.memory_space<vmem>>
    %74 = tpu.memref_slice %arg5[%c2_i32_47] : memref<8x!tpu.dma_semaphore, #tpu.memory_space<semaphore_mem>> -> memref<1x!tpu.dma_semaphore, #tpu.memory_space<semaphore_mem>>
    %75 = tpu.memref_squeeze %74 : memref<1x!tpu.dma_semaphore, #tpu.memory_space<semaphore_mem>> -> memref<!tpu.dma_semaphore, #tpu.memory_space<semaphore_mem>>
    tpu.wait_dma2 semaphore(%75 : memref<!tpu.dma_semaphore, #tpu.memory_space<semaphore_mem>>) src(%72 : memref<1x384xf32, #tpu.memory_space<any>>) dst(%73 : memref<1x384xf32, #tpu.memory_space<vmem>>)
    %c3_i32_51 = arith.constant 3 : i32
    %c0_i32_52 = arith.constant 0 : i32
    %76 = tpu.memref_slice %arg2[%27, %c0_i32_52] : memref<32x384xf32, #tpu.memory_space<any>> -> memref<1x384xf32, #tpu.memory_space<any>>
    %c3_i32_53 = arith.constant 3 : i32
    %c0_i32_54 = arith.constant 0 : i32
    %77 = tpu.memref_slice %arg4[%c3_i32_53, %c0_i32_54] : memref<8x384xf32, #tpu.memory_space<vmem>> -> memref<1x384xf32, #tpu.memory_space<vmem>>
    %78 = tpu.memref_slice %arg5[%c3_i32_51] : memref<8x!tpu.dma_semaphore, #tpu.memory_space<semaphore_mem>> -> memref<1x!tpu.dma_semaphore, #tpu.memory_space<semaphore_mem>>
    %79 = tpu.memref_squeeze %78 : memref<1x!tpu.dma_semaphore, #tpu.memory_space<semaphore_mem>> -> memref<!tpu.dma_semaphore, #tpu.memory_space<semaphore_mem>>
    tpu.wait_dma2 semaphore(%79 : memref<!tpu.dma_semaphore, #tpu.memory_space<semaphore_mem>>) src(%76 : memref<1x384xf32, #tpu.memory_space<any>>) dst(%77 : memref<1x384xf32, #tpu.memory_space<vmem>>)
    %c4_i32_55 = arith.constant 4 : i32
    %c0_i32_56 = arith.constant 0 : i32
    %80 = tpu.memref_slice %arg2[%35, %c0_i32_56] : memref<32x384xf32, #tpu.memory_space<any>> -> memref<1x384xf32, #tpu.memory_space<any>>
    %c4_i32_57 = arith.constant 4 : i32
    %c0_i32_58 = arith.constant 0 : i32
    %81 = tpu.memref_slice %arg4[%c4_i32_57, %c0_i32_58] : memref<8x384xf32, #tpu.memory_space<vmem>> -> memref<1x384xf32, #tpu.memory_space<vmem>>
    %82 = tpu.memref_slice %arg5[%c4_i32_55] : memref<8x!tpu.dma_semaphore, #tpu.memory_space<semaphore_mem>> -> memref<1x!tpu.dma_semaphore, #tpu.memory_space<semaphore_mem>>
    %83 = tpu.memref_squeeze %82 : memref<1x!tpu.dma_semaphore, #tpu.memory_space<semaphore_mem>> -> memref<!tpu.dma_semaphore, #tpu.memory_space<semaphore_mem>>
    tpu.wait_dma2 semaphore(%83 : memref<!tpu.dma_semaphore, #tpu.memory_space<semaphore_mem>>) src(%80 : memref<1x384xf32, #tpu.memory_space<any>>) dst(%81 : memref<1x384xf32, #tpu.memory_space<vmem>>)
    %c5_i32_59 = arith.constant 5 : i32
    %c0_i32_60 = arith.constant 0 : i32
    %84 = tpu.memref_slice %arg2[%43, %c0_i32_60] : memref<32x384xf32, #tpu.memory_space<any>> -> memref<1x384xf32, #tpu.memory_space<any>>
    %c5_i32_61 = arith.constant 5 : i32
    %c0_i32_62 = arith.constant 0 : i32
    %85 = tpu.memref_slice %arg4[%c5_i32_61, %c0_i32_62] : memref<8x384xf32, #tpu.memory_space<vmem>> -> memref<1x384xf32, #tpu.memory_space<vmem>>
    %86 = tpu.memref_slice %arg5[%c5_i32_59] : memref<8x!tpu.dma_semaphore, #tpu.memory_space<semaphore_mem>> -> memref<1x!tpu.dma_semaphore, #tpu.memory_space<semaphore_mem>>
    %87 = tpu.memref_squeeze %86 : memref<1x!tpu.dma_semaphore, #tpu.memory_space<semaphore_mem>> -> memref<!tpu.dma_semaphore, #tpu.memory_space<semaphore_mem>>
    tpu.wait_dma2 semaphore(%87 : memref<!tpu.dma_semaphore, #tpu.memory_space<semaphore_mem>>) src(%84 : memref<1x384xf32, #tpu.memory_space<any>>) dst(%85 : memref<1x384xf32, #tpu.memory_space<vmem>>)
    %c6_i32_63 = arith.constant 6 : i32
    %c0_i32_64 = arith.constant 0 : i32
    %88 = tpu.memref_slice %arg2[%51, %c0_i32_64] : memref<32x384xf32, #tpu.memory_space<any>> -> memref<1x384xf32, #tpu.memory_space<any>>
    %c6_i32_65 = arith.constant 6 : i32
    %c0_i32_66 = arith.constant 0 : i32
    %89 = tpu.memref_slice %arg4[%c6_i32_65, %c0_i32_66] : memref<8x384xf32, #tpu.memory_space<vmem>> -> memref<1x384xf32, #tpu.memory_space<vmem>>
    %90 = tpu.memref_slice %arg5[%c6_i32_63] : memref<8x!tpu.dma_semaphore, #tpu.memory_space<semaphore_mem>> -> memref<1x!tpu.dma_semaphore, #tpu.memory_space<semaphore_mem>>
    %91 = tpu.memref_squeeze %90 : memref<1x!tpu.dma_semaphore, #tpu.memory_space<semaphore_mem>> -> memref<!tpu.dma_semaphore, #tpu.memory_space<semaphore_mem>>
    tpu.wait_dma2 semaphore(%91 : memref<!tpu.dma_semaphore, #tpu.memory_space<semaphore_mem>>) src(%88 : memref<1x384xf32, #tpu.memory_space<any>>) dst(%89 : memref<1x384xf32, #tpu.memory_space<vmem>>)
    %c7_i32_67 = arith.constant 7 : i32
    %c0_i32_68 = arith.constant 0 : i32
    %92 = tpu.memref_slice %arg2[%59, %c0_i32_68] : memref<32x384xf32, #tpu.memory_space<any>> -> memref<1x384xf32, #tpu.memory_space<any>>
    %c7_i32_69 = arith.constant 7 : i32
    %c0_i32_70 = arith.constant 0 : i32
    %93 = tpu.memref_slice %arg4[%c7_i32_69, %c0_i32_70] : memref<8x384xf32, #tpu.memory_space<vmem>> -> memref<1x384xf32, #tpu.memory_space<vmem>>
    %94 = tpu.memref_slice %arg5[%c7_i32_67] : memref<8x!tpu.dma_semaphore, #tpu.memory_space<semaphore_mem>> -> memref<1x!tpu.dma_semaphore, #tpu.memory_space<semaphore_mem>>
    %95 = tpu.memref_squeeze %94 : memref<1x!tpu.dma_semaphore, #tpu.memory_space<semaphore_mem>> -> memref<!tpu.dma_semaphore, #tpu.memory_space<semaphore_mem>>
    tpu.wait_dma2 semaphore(%95 : memref<!tpu.dma_semaphore, #tpu.memory_space<semaphore_mem>>) src(%92 : memref<1x384xf32, #tpu.memory_space<any>>) dst(%93 : memref<1x384xf32, #tpu.memory_space<vmem>>)
    %c0 = arith.constant 0 : index
    %c0_71 = arith.constant 0 : index
    %96 = vector.load %arg4[%c0, %c0_71] : memref<8x384xf32, #tpu.memory_space<vmem>>, vector<8x384xf32>
    %c0_72 = arith.constant 0 : index
    %c0_73 = arith.constant 0 : index
    %97 = vector.load %arg3[%c0_72, %c0_73] : memref<8x384xf32, #tpu.memory_space<vmem>>, vector<8x384xf32>
    tpu.vector_store %arg3[%c0_72, %c0_73], %96 {strides = array<i32>} : memref<8x384xf32, #tpu.memory_space<vmem>>, vector<8x384xf32>,
    return
  }
  func.func @transform_1(%arg0: i32, %arg1: memref<16xi32, #tpu.memory_space<smem>>) -> (i32, i32) {
    %c0_i32 = arith.constant 0 : i32
    %c0_i32_0 = arith.constant 0 : i32
    return %arg0, %c0_i32 : i32, i32
  }
}

</mosaic_0001>

<bundles_post_ra>
// kernel: tpu_custom_call.1
= control target key start
LH: loop header
LB: loop body
LE: loop exit
PB: predicated region body
PF: predicated region fallthrough
CT: control target
= control target key end

     0   :  { %s977_s0 = inlined_call_operand.hbm [shape: s32[16], index: 0, kind: input, shape index: {}]   ;;  %s978_s1 = inlined_call_operand.hbm [shape: f32[32,384], index: 1, kind: input, shape index: {}]   ;;  %s979_s2 = inlined_call_operand.hbm [shape: f32[16,384], index: 2, kind: output, shape index: {}]  }
   0x1   :  { %989 = sst [smem:[#allocation32_spill]] %s979_s2  ;;  %s405_s11 = scalar_lea.hbm %s977_s0, 16 }
   0x2   :  { %p406_p0 = scmp.ne.s32.totalorder %s977_s0, %s405_s11  ;;  %p409_p1 = scmp.lt.u32.totalorder %s405_s11, %s977_s0 }
   0x4   :  { %p411_p2 = pnand %p409_p1, %p406_p0 }
   0x6   :  { %414 = shalt.err (!%p411_p2)  }
   0x7   :  { %s681_s16 = smov [#allocation5]  }
   0x8   :  { %8 = dma.hbm_to_smem %s977_s0, 16, %s681_s16, [#allocation4] }
   0x9   :  { %647 = dma.done.wait [#allocation4], 16 }
   0xa   :  { %648 = vsyncadd [#allocation4], 4294967280 }
   0xb   :  { %10 = sfence }
   0xc   :  { %11 = vsyncpa [#allocation7], 0 }
   0xd   :  { %13 = vsyncpa [#allocation7 + $0x1], 0  ;;  %s720_s19 = smov 0   ;;  %s722_s20 = smov 0  }
   0xe   :  { %s724_s21 = smov 0  }
   0xf LB: > { %990 = sst [smem:[#allocation26_spill]] %s671_s19  ;;  %s338_s0 = sadd.s32 4294967295, %s679_s21   ;;  %s679_s21 = sphi %s724_s21, %s1004_s21   ;;  %s675_s20 = sphi %s722_s20, %s1006_s20   ;;  %s671_s19 = sphi %s720_s19, %s1005_s19  }
  0x10   : > { %991 = sst [smem:[#allocation27_spill]] %s675_s20  ;;  %s737_s22 = sadd.s32 1, %s679_s21  }
  0x11   : > { %992 = sst [smem:[#allocation28_spill]] %s737_s22  ;;  %s22_s23 = ssub.s32 %s679_s21, %s737_s22 }
  0x12   : > { %s25_s24 = sadd.s32 1, %s675_s20  ;;  %p23_p3 = scmp.eq.s32.totalorder %s22_s23, 0 }
  0x13   : > { %p339_p4 = scmp.ne.s32.totalorder %s22_s23, 0  ;;  %p29_p5 = scmp.eq.s32.totalorder %s679_s21, 1 }
  0x14   : > { %p34_p6 = scmp.ne.s32.totalorder %s675_s20, %s671_s19  ;;  %p35_p8 = scmp.eq.s32.totalorder %s338_s0, 1 }
  0x15   : > { %s746_s25 = scalar_select %p23_p3, %s675_s20, %s25_s24  }
  0x16   : > { %p748_p7 = por %p339_p4, %p29_p5  ;;  %p752_p9 = por %p35_p8, %p34_p6 }
  0x17   : > { %993 = sst [smem:[#allocation29_spill]] %s746_s25  ;;  %p340_p10 = scmp.ge.s32.totalorder %s679_s21, 2 }
  0x18   : > { %s994_s26 = scalar_select %p748_p7, 1, 0 }
  0x19   : > { %s996_s27 = scalar_select %p752_p9, 1, 0 }
  0x1a   : > { %995 = sst [smem:[#allocation30_spill]] %s994_s26  ;;  %44 = sbr.rel (%p340_p10) target bundleno = 275 (0x113), region = 12 }
  0x1b   : > { %997 = sst [smem:[#allocation31_spill]] %s996_s27  ;;  %s980_s28 = sand.u32 (!%p340_p10), 1, %s675_s20  }
  0x1c   : > { %s759_s29 = sshll.u32 (!%p340_p10), %s679_s21, 3  ;;  %s763_s30 = smul.u32 (!%p340_p10), 24, %s980_s28 }
  0x1d   : > { %s53_s3 = sld [smem:[#allocation5 + %s759_s29]] (!%p340_p10)  ;;  %s682_s4 = smov (!%p340_p10), [#allocation2]  }
  0x1e   : > { %s61_s5 = sshll.u32 (!%p340_p10), %s682_s4, 4  ;;  %s65_s6 = sadd.s32 (!%p340_p10), 1, %s759_s29  ;;  %s766_s5 = int_to_ptr.vmem [resolvable:$true] %s61_s5 }
  0x1f   : > { %s769_s7 = sld [smem:[#allocation5 + %s65_s6]] (!%p340_p10)  ;;  %s683_s8 = smov (!%p340_p10), [#allocation2 + $0x1]  }
  0x20   : > { %s76_s9 = sshll.u32 (!%p340_p10), %s683_s8, 4  ;;  %s80_s13 = sadd.s32 (!%p340_p10), 2, %s759_s29  ;;  %s771_s9 = int_to_ptr.vmem [resolvable:$true] %s76_s9 }
  0x21   : > { %s774_s15 = sld [smem:[#allocation5 + %s80_s13]]  ;;  %s684_s17 = smov [#allocation2 + $0x2]  }
  0x22   : > { %s91_s18 = sshll.u32 %s684_s17, 4  ;;  %s802_s18 = int_to_ptr.vmem [resolvable:$true] %s91_s18 }
  0x23   : > { %s54_s10 = sshrl.u32 %s53_s3, 3  ;;  %s55_s11 = sand.u32 7, %s53_s3  }
  0x24   : > { %s56_s12 = smul.u32 24, %s54_s10  ;;  %s783_s3 = scalar_lea.hbm %s978_s1, 1536 }
  0x25   : > { %s67_s4 = sshrl.u32 %s769_s7, 3 }
  0x26   : > { %s57_s14 = sadd.s32 %s56_s12, %s55_s11 }
  0x27   : > { %s342_s16 = sshll.u32 %s57_s14, 4 }
  0x28   : > { %s59_s24 = scalar_lea.hbm %s978_s1, %s342_s16 }
  0x29   : > { %s415_s6 = scalar_lea.hbm %s59_s24, 48  ;;  %p418_p12 = scmp.lt.u32.totalorder %s59_s24, %s978_s1 }
  0x2a   : > { %p416_p11 = scmp.ne.s32.totalorder %s59_s24, %s415_s6  ;;  %p419_p13 = scmp.lt.u32.totalorder %s783_s3, %s415_s6 }
  0x2b   : > { %p421_p1 = scmp.lt.u32.totalorder %s415_s6, %s59_s24 }
  0x2c   : > { %p420_p0 = por %p419_p13, %p418_p12 }
  0x2e   : > { %p422_p2 = por %p421_p1, %p420_p0 }
  0x30   : > { %p423_p3 = pnand %p422_p2, %p416_p11 }
  0x32   : > { %426 = shalt.err (!%p423_p3)  }
  0x33   : > { %s427_s11 = scalar_lea.vmem %s766_s5, 48  ;;  %s792_s28 = scalar_lea.vmem %s766_s5, 384 }
  0x34   : > { %p428_p4 = scmp.ne.s32.totalorder %s766_s5, %s427_s11  ;;  %p432_p5 = scmp.lt.s32.totalorder %s766_s5, %s766_s5 }
  0x35   : > { %p433_p6 = scmp.lt.s32.totalorder %s792_s28, %s427_s11 }
  0x37   : > { %p434_p8 = por %p433_p6, %p432_p5 }
  0x39   : > { %p435_p10 = pnand %p434_p8, %p428_p4 }
  0x3b   : > { %438 = shalt.err (!%p435_p10)  }
  0x3c   : > { %s685_s25 = smov 128   ;;  %s686_s12 = smov 1  }
  0x3d   : > { %64 = dma.hbm_to_vmem [thread:$0]  %s59_s24, 48, %s766_s5, [#allocation3], %s685_s25, %s685_s25, %s686_s12 }
  0x3e   : > { %s68_s13 = sand.u32 7, %s769_s7   ;;  %s69_s14 = smul.u32 24, %s67_s4 }
  0x3f   : > { %s95_s16 = sadd.s32 3, %s759_s29  ;;  %s82_s0 = sshrl.u32 %s774_s15, 3 }
  0x40   : > { %s70_s17 = sadd.s32 %s69_s14, %s68_s13  ;;  %s83_s6 = sand.u32 7, %s774_s15  }
  0x41   : > { %s343_s23 = sshll.u32 %s70_s17, 4  ;;  %s84_s22 = smul.u32 24, %s82_s0 }
  0x42   : > { %s72_s11 = scalar_lea.hbm %s978_s1, %s343_s23 }
  0x43   : > { %s439_s27 = scalar_lea.hbm %s72_s11, 48  ;;  %p442_p12 = scmp.lt.u32.totalorder %s72_s11, %s978_s1 }
  0x44   : > { %p440_p11 = scmp.ne.s32.totalorder %s72_s11, %s439_s27  ;;  %p443_p13 = scmp.lt.u32.totalorder %s783_s3, %s439_s27 }
  0x45   : > { %p445_p1 = scmp.lt.u32.totalorder %s439_s27, %s72_s11 }
  0x46   : > { %p444_p0 = por %p443_p13, %p442_p12 }
  0x48   : > { %p446_p2 = por %p445_p1, %p444_p0 }
  0x4a   : > { %p447_p3 = pnand %p446_p2, %p440_p11 }
  0x4c   : > { %450 = shalt.err (!%p447_p3)  }
  0x4d   : > { %s451_s7 = scalar_lea.vmem %s771_s9, 48  ;;  %p456_p5 = scmp.lt.s32.totalorder %s771_s9, %s766_s5 }
  0x4e   : > { %p452_p4 = scmp.ne.s32.totalorder %s771_s9, %s451_s7  ;;  %p457_p6 = scmp.lt.s32.totalorder %s792_s28, %s451_s7 }
  0x50   : > { %p458_p8 = por %p457_p6, %p456_p5 }
  0x52   : > { %p459_p10 = pnand %p458_p8, %p452_p4 }
  0x54   : > { %462 = shalt.err (!%p459_p10)  }
  0x55   : > { %79 = dma.hbm_to_vmem [thread:$0]  %s72_s11, 48, %s771_s9, [#allocation3 + $0x1], %s685_s25, %s685_s25, %s686_s12 }
  0x56   : > { %s85_s2 = sadd.s32 %s84_s22, %s83_s6  ;;  %s823_s19 = sld [smem:[#allocation5 + %s95_s16]] }
  0x57   : > { %s344_s27 = sshll.u32 %s85_s2, 4  ;;  %s687_s13 = smov [#allocation2 + $0x3]  }
  0x58   : > { %s87_s4 = scalar_lea.hbm %s978_s1, %s344_s27  ;;  %s106_s14 = sshll.u32 %s687_s13, 4  ;;  %s841_s14 = int_to_ptr.vmem [resolvable:$true] %s106_s14 }
  0x59   : > { %s463_s17 = scalar_lea.hbm %s87_s4, 48  ;;  %p466_p12 = scmp.lt.u32.totalorder %s87_s4, %s978_s1 }
  0x5a   : > { %p464_p11 = scmp.ne.s32.totalorder %s87_s4, %s463_s17  ;;  %p467_p13 = scmp.lt.u32.totalorder %s783_s3, %s463_s17 }
  0x5b   : > { %p469_p1 = scmp.lt.u32.totalorder %s463_s17, %s87_s4 }
  0x5c   : > { %p468_p0 = por %p467_p13, %p466_p12 }
  0x5e   : > { %p470_p2 = por %p469_p1, %p468_p0 }
  0x60   : > { %p471_p3 = pnand %p470_p2, %p464_p11 }
  0x62   : > { %474 = shalt.err (!%p471_p3)  }
  0x63   : > { %s475_s22 = scalar_lea.vmem %s802_s18, 48  ;;  %p480_p5 = scmp.lt.s32.totalorder %s802_s18, %s766_s5 }
  0x64   : > { %p476_p4 = scmp.ne.s32.totalorder %s802_s18, %s475_s22  ;;  %p481_p6 = scmp.lt.s32.totalorder %s792_s28, %s475_s22 }
  0x66   : > { %p482_p8 = por %p481_p6, %p480_p5 }
  0x68   : > { %p483_p10 = pnand %p482_p8, %p476_p4 }
  0x6a   : > { %486 = shalt.err (!%p483_p10)  }
  0x6b   : > { %94 = dma.hbm_to_vmem [thread:$0]  %s87_s4, 48, %s802_s18, [#allocation3 + $0x2], %s685_s25, %s685_s25, %s686_s12 }
  0x6c   : > { %s110_s9 = sadd.s32 4, %s759_s29  ;;  %s97_s6 = sshrl.u32 %s823_s19, 3 }
  0x6d   : > { %s844_s16 = sld [smem:[#allocation5 + %s110_s9]]  ;;  %s98_s8 = sand.u32 7, %s823_s19  }
  0x6e   : > { %s99_s10 = smul.u32 24, %s97_s6  ;;  %s688_s11 = smov [#allocation2 + $0x4]  }
  0x6f   : > { %s121_s7 = sshll.u32 %s688_s11, 4  ;;  %s125_s2 = sadd.s32 5, %s759_s29  ;;  %s848_s7 = int_to_ptr.vmem [resolvable:$true] %s121_s7 }
  0x70   : > { %s100_s27 = sadd.s32 %s99_s10, %s98_s8  ;;  %s851_s15 = sld [smem:[#allocation5 + %s125_s2]] }
  0x71   : > { %s345_s24 = sshll.u32 %s100_s27, 4 }
  0x72   : > { %s102_s13 = scalar_lea.hbm %s978_s1, %s345_s24 }
  0x73   : > { %s112_s17 = sshrl.u32 %s844_s16, 3  ;;  %s487_s0 = scalar_lea.hbm %s102_s13, 48 }
  0x74   : > { %p488_p11 = scmp.ne.s32.totalorder %s102_s13, %s487_s0  ;;  %p490_p12 = scmp.lt.u32.totalorder %s102_s13, %s978_s1 }
  0x75   : > { %p491_p13 = scmp.lt.u32.totalorder %s783_s3, %s487_s0  ;;  %p493_p1 = scmp.lt.u32.totalorder %s487_s0, %s102_s13 }
  0x77   : > { %p492_p0 = por %p491_p13, %p490_p12 }
  0x79   : > { %p494_p2 = por %p493_p1, %p492_p0 }
  0x7b   : > { %p495_p3 = pnand %p494_p2, %p488_p11 }
  0x7d   : > { %498 = shalt.err (!%p495_p3)  }
  0x7e   : > { %s499_s19 = scalar_lea.vmem %s841_s14, 48  ;;  %p504_p5 = scmp.lt.s32.totalorder %s841_s14, %s766_s5 }
  0x7f   : > { %p500_p4 = scmp.ne.s32.totalorder %s841_s14, %s499_s19  ;;  %p505_p6 = scmp.lt.s32.totalorder %s792_s28, %s499_s19 }
  0x81   : > { %p506_p8 = por %p505_p6, %p504_p5 }
  0x83   : > { %p507_p10 = pnand %p506_p8, %p500_p4 }
  0x85   : > { %510 = shalt.err (!%p507_p10)  }
  0x86   : > { %109 = dma.hbm_to_vmem [thread:$0]  %s102_s13, 48, %s841_s14, [#allocation3 + $0x3], %s685_s25, %s685_s25, %s686_s12 }
  0x87   : > { %s113_s9 = sand.u32 7, %s844_s16   ;;  %s114_s6 = smul.u32 24, %s112_s17 }
  0x88   : > { %s689_s8 = smov [#allocation2 + $0x5]   ;;  %s140_s11 = sadd.s32 6, %s759_s29 }
  0x89   : > { %s136_s10 = sshll.u32 %s689_s8, 4  ;;  %s115_s2 = sadd.s32 %s114_s6, %s113_s9  ;;  %s137_s10 = int_to_ptr.vmem [resolvable:$true] %s136_s10 }
  0x8a   : > { %s127_s27 = sshrl.u32 %s851_s15, 3  ;;  %s346_s24 = sshll.u32 %s115_s2, 4 }
  0x8b   : > { %s128_s18 = sand.u32 7, %s851_s15   ;;  %s117_s23 = scalar_lea.hbm %s978_s1, %s346_s24 }
  0x8c   : > { %s129_s22 = smul.u32 24, %s127_s27  ;;  %s511_s19 = scalar_lea.hbm %s117_s23, 48 }
  0x8d   : > { %p512_p11 = scmp.ne.s32.totalorder %s117_s23, %s511_s19  ;;  %p514_p12 = scmp.lt.u32.totalorder %s117_s23, %s978_s1 }
  0x8e   : > { %p515_p13 = scmp.lt.u32.totalorder %s783_s3, %s511_s19  ;;  %p517_p1 = scmp.lt.u32.totalorder %s511_s19, %s117_s23 }
  0x90   : > { %p516_p0 = por %p515_p13, %p514_p12 }
  0x92   : > { %p518_p2 = por %p517_p1, %p516_p0 }
  0x94   : > { %p519_p3 = pnand %p518_p2, %p512_p11 }
  0x96   : > { %522 = shalt.err (!%p519_p3)  }
  0x97   : > { %s523_s14 = scalar_lea.vmem %s848_s7, 48  ;;  %p528_p5 = scmp.lt.s32.totalorder %s848_s7, %s766_s5 }
  0x98   : > { %p524_p4 = scmp.ne.s32.totalorder %s848_s7, %s523_s14  ;;  %p529_p6 = scmp.lt.s32.totalorder %s792_s28, %s523_s14 }
  0x9a   : > { %p530_p8 = por %p529_p6, %p528_p5 }
  0x9c   : > { %p531_p10 = pnand %p530_p8, %p524_p4 }
  0x9e   : > { %534 = shalt.err (!%p531_p10)  }
  0x9f   : > { %124 = dma.hbm_to_vmem [thread:$0]  %s117_s23, 48, %s848_s7, [#allocation3 + $0x4], %s685_s25, %s685_s25, %s686_s12 }
  0xa0   : > { %s130_s20 = sadd.s32 %s129_s22, %s128_s18  ;;  %s141_s16 = sld [smem:[#allocation5 + %s140_s11]] }
  0xa1   : > { %s347_s26 = sshll.u32 %s130_s20, 4 }
  0xa2   : > { %s132_s17 = scalar_lea.hbm %s978_s1, %s347_s26 }
  0xa3   : > { %s535_s9 = scalar_lea.hbm %s132_s17, 48  ;;  %p538_p12 = scmp.lt.u32.totalorder %s132_s17, %s978_s1 }
  0xa4   : > { %p536_p11 = scmp.ne.s32.totalorder %s132_s17, %s535_s9  ;;  %p539_p13 = scmp.lt.u32.totalorder %s783_s3, %s535_s9 }
  0xa5   : > { %p541_p1 = scmp.lt.u32.totalorder %s535_s9, %s132_s17 }
  0xa6   : > { %p540_p0 = por %p539_p13, %p538_p12 }
  0xa8   : > { %p542_p2 = por %p541_p1, %p540_p0 }
  0xaa   : > { %p543_p3 = pnand %p542_p2, %p536_p11 }
  0xac   : > { %546 = shalt.err (!%p543_p3)  }
  0xad   : > { %s547_s7 = scalar_lea.vmem %s137_s10, 48  ;;  %p552_p5 = scmp.lt.s32.totalorder %s137_s10, %s766_s5 }
  0xae   : > { %p548_p4 = scmp.ne.s32.totalorder %s137_s10, %s547_s7  ;;  %p553_p6 = scmp.lt.s32.totalorder %s792_s28, %s547_s7 }
  0xb0   : > { %p554_p8 = por %p553_p6, %p552_p5 }
  0xb2   : > { %p555_p10 = pnand %p554_p8, %p548_p4 }
  0xb4   : > { %558 = shalt.err (!%p555_p10)  }
  0xb5   : > { %139 = dma.hbm_to_vmem [thread:$0]  %s132_s17, 48, %s137_s10, [#allocation3 + $0x5], %s685_s25, %s685_s25, %s686_s12 }
  0xb6   : > { %s155_s11 = sadd.s32 7, %s759_s29  ;;  %s690_s27 = smov [#allocation2 + $0x6]  }
  0xb7   : > { %s903_s2 = sld [smem:[#allocation5 + %s155_s11]]  ;;  %s151_s24 = sshll.u32 %s690_s27, 4  ;;  %s152_s24 = int_to_ptr.vmem [resolvable:$true] %s151_s24 }
  0xb8   : > { %s142_s18 = sshrl.u32 %s141_s16, 3  ;;  %s143_s4 = sand.u32 7, %s141_s16  }
  0xb9   : > { %s144_s0 = smul.u32 24, %s142_s18  ;;  %s691_s22 = smov [#allocation2 + $0x7]  }
  0xba   : > { %s166_s19 = sshll.u32 %s691_s22, 4  ;;  %s167_s19 = int_to_ptr.vmem [resolvable:$true] %s166_s19 }
  0xbb   : > { %s145_s23 = sadd.s32 %s144_s0, %s143_s4 }
  0xbc   : > { %s348_s14 = sshll.u32 %s145_s23, 4 }
  0xbd   : > { %s157_s20 = sshrl.u32 %s903_s2, 3  ;;  %s147_s29 = scalar_lea.hbm %s978_s1, %s348_s14 }
  0xbe   : > { %s158_s10 = sand.u32 7, %s903_s2   ;;  %s559_s13 = scalar_lea.hbm %s147_s29, 48 }
  0xbf   : > { %p560_p11 = scmp.ne.s32.totalorder %s147_s29, %s559_s13  ;;  %p562_p12 = scmp.lt.u32.totalorder %s147_s29, %s978_s1 }
  0xc0   : > { %p563_p13 = scmp.lt.u32.totalorder %s783_s3, %s559_s13  ;;  %p565_p1 = scmp.lt.u32.totalorder %s559_s13, %s147_s29 }
  0xc2   : > { %p564_p0 = por %p563_p13, %p562_p12 }
  0xc4   : > { %p566_p2 = por %p565_p1, %p564_p0 }
  0xc6   : > { %p567_p3 = pnand %p566_p2, %p560_p11 }
  0xc8   : > { %570 = shalt.err (!%p567_p3)  }
  0xc9   : > { %s571_s16 = scalar_lea.vmem %s152_s24, 48  ;;  %p576_p5 = scmp.lt.s32.totalorder %s152_s24, %s766_s5 }
  0xca   : > { %p572_p4 = scmp.ne.s32.totalorder %s152_s24, %s571_s16  ;;  %p577_p6 = scmp.lt.s32.totalorder %s792_s28, %s571_s16 }
  0xcc   : > { %p578_p8 = por %p577_p6, %p576_p5 }
  0xce   : > { %p579_p10 = pnand %p578_p8, %p572_p4 }
  0xd0   : > { %582 = shalt.err (!%p579_p10)  }
  0xd1   : > { %154 = dma.hbm_to_vmem [thread:$0]  %s147_s29, 48, %s152_s24, [#allocation3 + $0x6], %s685_s25, %s685_s25, %s686_s12 }
  0xd2   : > { %s159_s6 = smul.u32 24, %s157_s20 }
  0xd4   : > { %s160_s8 = sadd.s32 %s159_s6, %s158_s10 }
  0xd5   : > { %s349_s7 = sshll.u32 %s160_s8, 4 }
  0xd6   : > { %s162_s27 = scalar_lea.hbm %s978_s1, %s349_s7 }
  0xd7   : > { %s583_s18 = scalar_lea.hbm %s162_s27, 48  ;;  %p586_p12 = scmp.lt.u32.totalorder %s162_s27, %s978_s1 }
  0xd8   : > { %p584_p11 = scmp.ne.s32.totalorder %s162_s27, %s583_s18  ;;  %p587_p13 = scmp.lt.u32.totalorder %s783_s3, %s583_s18 }
  0xd9   : > { %p589_p1 = scmp.lt.u32.totalorder %s583_s18, %s162_s27 }
  0xda   : > { %p588_p0 = por %p587_p13, %p586_p12 }
  0xdc   : > { %p590_p2 = por %p589_p1, %p588_p0 }
  0xde   : > { %p591_p3 = pnand %p590_p2, %p584_p11 }
  0xe0   : > { %594 = shalt.err (!%p591_p3)  }
  0xe1   : > { %s595_s24 = scalar_lea.vmem %s167_s19, 48  ;;  %p600_p5 = scmp.lt.s32.totalorder %s167_s19, %s766_s5 }
  0xe2   : > { %p596_p4 = scmp.ne.s32.totalorder %s167_s19, %s595_s24  ;;  %p601_p6 = scmp.lt.s32.totalorder %s792_s28, %s595_s24 }
  0xe4   : > { %p602_p8 = por %p601_p6, %p600_p5 }
  0xe6   : > { %p603_p10 = pnand %p602_p8, %p596_p4 }
  0xe8   : > { %606 = shalt.err (!%p603_p10)  }
  0xe9   : > { %169 = dma.hbm_to_vmem [thread:$0]  %s162_s27, 48, %s167_s19, [#allocation3 + $0x7], %s685_s25, %s685_s25, %s686_s12 }
  0xea   : > { %s51_s3 = scalar_lea.vmem [#allocation6], %s763_s30 }
  0xeb   : > { %649 = dma.done.wait [#allocation3], 48 }
  0xec   : > { %650 = vsyncadd [#allocation3], 4294967248 }
  0xed   : > { %651 = dma.done.wait [#allocation3 + $0x1], 48 }
  0xee   : > { %652 = vsyncadd [#allocation3 + $0x1], 4294967248 }
  0xef   : > { %653 = dma.done.wait [#allocation3 + $0x2], 48 }
  0xf0   : > { %654 = vsyncadd [#allocation3 + $0x2], 4294967248 }
  0xf1   : > { %655 = dma.done.wait [#allocation3 + $0x3], 48 }
  0xf2   : > { %656 = vsyncadd [#allocation3 + $0x3], 4294967248 }
  0xf3   : > { %657 = dma.done.wait [#allocation3 + $0x4], 48 }
  0xf4   : > { %658 = vsyncadd [#allocation3 + $0x4], 4294967248 }
  0xf5   : > { %659 = dma.done.wait [#allocation3 + $0x5], 48 }
  0xf6   : > { %660 = vsyncadd [#allocation3 + $0x5], 4294967248 }
  0xf7   : > { %661 = dma.done.wait [#allocation3 + $0x6], 48 }
  0xf8   : > { %662 = vsyncadd [#allocation3 + $0x6], 4294967248 }
  0xf9   : > { %663 = dma.done.wait [#allocation3 + $0x7], 48 }
  0xfa   : > { %664 = vsyncadd [#allocation3 + $0x7], 4294967248  ;;  %s998_s5 = sld [smem:[#allocation27_spill]]  ;;  %s362_s30 = smul.u32 384, %s679_s21  ;;  %v187_v0 = vld [vmem:[#allocation2] sm:$0xff]  ;;  %v188_v1 = vld [vmem:[#allocation2 + $0x8] sm:$0xff] }
  0xfb   : > { %s208_s25 = sshll.u32 %s51_s3, 4  ;;  %s1000_s22 = sld [smem:[#allocation32_spill]]  ;;  %v189_v2 = vld [vmem:[#allocation2 + $0x10] sm:$0xff]  ;;  %190 = vst [vmem:[%s51_s3] sm:$0xff] %v187_v0  ;;  %191 = vst [vmem:[%s51_s3 + $0x8] sm:$0xff] %v188_v1  ;;  %s938_s25 = int_to_ptr.vmem [resolvable:$true] %s208_s25 }
  0xfc   : > { %192 = vst [vmem:[%s51_s3 + $0x10] sm:$0xff] %v189_v2  ;;  %s607_s26 = scalar_lea.vmem %s938_s25, 384  ;;  %s692_s15 = smov [#allocation6]  }
  0xfd   : > { %p608_p11 = scmp.ne.s32.totalorder %s938_s25, %s607_s26  ;;  %s611_s29 = sshll.u32 %s692_s15, 4  ;;  %s612_s29 = int_to_ptr.vmem [resolvable:$false] %s611_s29 }
  0xfe   : > { %s613_s10 = scalar_lea.vmem %s612_s29, 768  ;;  %p614_p0 = scmp.lt.s32.totalorder %s938_s25, %s612_s29 }
  0xff   : > { %p609_p12 = pnand %p608_p11, %p748_p7  ;;  %p615_p1 = scmp.lt.s32.totalorder %s613_s10, %s607_s26 }
 0x100   : > { %s1001_s14 = sand.u32 1, %s998_s5  }
 0x101   : > { %s936_s19 = scalar_lea.hbm %s1000_s22, %s362_s30  ;;  %s194_s20 = scalar_lea.sflag [#allocation7], %s1001_s14 }
 0x102   : > { %p610_p13 = pneg %p609_p12  ;;  %p616_p2 = por %p615_p1, %p614_p0 }
 0x104   : > { %p617_p3 = pnand %p616_p2, %p610_p13 }
 0x106   : > { %620 = shalt.err (!%p617_p3)
}
 0x107   : > { %s621_s13 = scalar_lea.hbm %s936_s19, 384  ;;  %s625_s16 = scalar_lea.hbm %s1000_s22, 768 }
 0x108   : > { %p622_p4 = scmp.ne.s32.totalorder %s936_s19, %s621_s13  ;;  %p626_p8 = scmp.lt.u32.totalorder %s936_s19, %s1000_s22 }
 0x109   : > { %p627_p10 = scmp.lt.u32.totalorder %s625_s16, %s621_s13  ;;  %p629_p12 = scmp.lt.u32.totalorder %s621_s13, %s936_s19 }
 0x10a   : > { %p623_p5 = pnand %p622_p4, %p748_p7 }
 0x10b   : > { %p628_p11 = por %p627_p10, %p626_p8 }
 0x10c   : > { %p624_p6 = pneg %p623_p5 }
 0x10d   : > { %p630_p13 = por %p629_p12, %p628_p11 }
 0x10f   : > { %p631_p0 = pnand %p630_p13, %p624_p6 }
 0x111   : > { %634 = shalt.err (!%p631_p0)
}
 0x112   : > { %363 = dma.vmem_to_hbm [thread:$0]  (%p748_p7), %s938_s25, 384, %s936_s19, %s194_s20  }
 0x113 PF: > { %s1002_s7 = sld [smem:[#allocation26_spill]]  ;;  %p369_p1 = scmp.ge.s32.totalorder %s679_s21, 1 }
 0x115   : > { %p366_p2 = pnand %p369_p1, %p752_p9 }
 0x119   : > { %s220_s2 = sand.u32 1, %s1002_s7  }
 0x11a   : > { %s221_s27 = scalar_lea.sflag [#allocation7], %s220_s2 }
 0x11b   : > { %666 = dma.done.wait (!%p366_p2), %s221_s27, 384  }
 0x11c   : > { %668 = vsyncadd (!%p366_p2), %s221_s27, 4294966912  ;;  %s1004_s21 = sld [smem:[#allocation28_spill]]  ;;  %s1005_s19 = sld [smem:[#allocation27_spill]] }
 0x11d   : > { %s1006_s20 = sld [smem:[#allocation29_spill]] }
 0x122   : > { %p16_p3 = scmp.ge.s32.totalorder %s1004_s21, 3  }
 0x124   :  { %18 = sbr.rel (!%p16_p3) target bundleno = 15 (0xf), region = 73 }
 0x12b   :  { %226 = vsyncpa [#allocation7], 1 }
 0x12c   :  { %228 = vsyncpa [#allocation7 + $0x1], 1 }
 0x12d   :  { %229 = vsyncmov [#allocation3] }
 0x130   :  { %s230_s18 = vpop.sfrf %229 }
 0x131   :  { %p353_p7 = scmp.ne.s32.totalorder %s230_s18, 0 }
 0x133   :  { %234 = shalt.err (%p353_p7)  }
 0x134   :  { %236 = vsyncmov [#allocation3 + $0x1] }
 0x137   :  { %s237_s4 = vpop.sfrf %236 }
 0x138   :  { %p354_p9 = scmp.ne.s32.totalorder %s237_s4, 0 }
 0x13a   :  { %241 = shalt.err (%p354_p9)  }
 0x13b   :  { %243 = vsyncmov [#allocation3 + $0x2] }
 0x13e   :  { %s244_s0 = vpop.sfrf %243 }
 0x13f   :  { %p355_p4 = scmp.ne.s32.totalorder %s244_s0, 0 }
 0x141   :  { %248 = shalt.err (%p355_p4)  }
 0x142   :  { %250 = vsyncmov [#allocation3 + $0x3] }
 0x145   :  { %s251_s24 = vpop.sfrf %250 }
 0x146   :  { %p356_p5 = scmp.ne.s32.totalorder %s251_s24, 0 }
 0x148   :  { %255 = shalt.err (%p356_p5)  }
 0x149   :  { %257 = vsyncmov [#allocation3 + $0x4] }
 0x14c   :  { %s258_s21 = vpop.sfrf %257 }
 0x14d   :  { %p357_p6 = scmp.ne.s32.totalorder %s258_s21, 0 }
 0x14f   :  { %262 = shalt.err (%p357_p6)  }
 0x150   :  { %264 = vsyncmov [#allocation3 + $0x5] }
 0x153   :  { %s265_s1 = vpop.sfrf %264 }
 0x154   :  { %p358_p8 = scmp.ne.s32.totalorder %s265_s1, 0 }
 0x156   :  { %269 = shalt.err (%p358_p8)  }
 0x157   :  { %271 = vsyncmov [#allocation3 + $0x6] }
 0x15a   :  { %s272_s3 = vpop.sfrf %271 }
 0x15b   :  { %p359_p10 = scmp.ne.s32.totalorder %s272_s3, 0 }
 0x15d   :  { %276 = shalt.err (%p359_p10)  }
 0x15e   :  { %278 = vsyncmov [#allocation3 + $0x7] }
 0x161   :  { %s279_s5 = vpop.sfrf %278 }
 0x162   :  { %p360_p11 = scmp.ne.s32.totalorder %s279_s5, 0 }
 0x164   :  { %283 = shalt.err (%p360_p11)  }

</bundles_post_ra>
